<compile_context>
chip_gen: v7x
topology: tpu7x:2x2x1
jax: 0.10.0
libtpu: 0.0.40
codegen_flags: <defaults>
</compile_context>

<pallas_src>
import jax
import jax.numpy as jnp
from jax.experimental import pallas as pl
from jax.experimental.pallas import tpu as pltpu


KH = KW = 5
STRIDE = 5
PAD = 1


# ----------------------------- Pallas kernel ------------------------------

def _make_fused_kernel(R, WO, kw_taps):
    def kernel(x_ref, wt_ref, b_ref, a_ref, g_ref, o_ref):
        # x_ref: (1, M1, 100)   M1 = Cin*H   (one batch sample per grid step)
        # wt   : (100, 200)     b: (1, 200)
        # a    : (KW*R, M1)     R = Cout*Ho
        # g    : (200, KW*WO)
        # o    : (1, R, WO)
        y = jnp.dot(x_ref[0], wt_ref[...], preferred_element_type=jnp.float32)
        y = jnp.maximum(y + b_ref[...], 0.0)                          # (M1, 200), stays in vregs

        # One stacked matmul instead of KW tiny ones (sublane-dense on the MXU).
        u = jnp.dot(a_ref[...], y, preferred_element_type=jnp.float32)      # (KW*R, 200)
        # One fused epilogue matmul; only the KW diagonal blocks are needed.
        v = jnp.dot(u, g_ref[...], preferred_element_type=jnp.float32)      # (KW*R, KW*WO)

        acc = v[0:R, 0:WO]
        for kw in range(1, kw_taps):                                   # static, 4 cheap VPU adds
            acc = acc + v[kw * R:(kw + 1) * R, kw * WO:(kw + 1) * WO]
        o_ref[0] = jnp.maximum(acc, 0.0)

    return kernel


def fused_forward(x3d, wt, b_row, A_cat, Gcat, R, WO):
    N, M1, Kin = x3d.shape
    Klin, Wlin = wt.shape
    return pl.pallas_call(
        _make_fused_kernel(R, WO, KW),
        out_shape=jax.ShapeDtypeStruct((N, R, WO), jnp.float32),
        grid_spec=pltpu.PrefetchScalarGridSpec(
            num_scalar_prefetch=0,
            grid=(N,),
            in_specs=[
                pl.BlockSpec((1, M1, Kin), lambda n: (n, 0, 0)),       # per-batch input block
                pl.BlockSpec((Klin, Wlin), lambda n: (0, 0)),          # weights: constant index
                pl.BlockSpec((1, Wlin), lambda n: (0, 0)),             #   maps -> fetched once,
                pl.BlockSpec(A_cat.shape, lambda n: (0, 0)),           #   VMEM-resident across
                pl.BlockSpec(Gcat.shape, lambda n: (0, 0)),            #   grid steps
            ],
            out_specs=pl.BlockSpec((1, R, WO), lambda n: (n, 0, 0)),
        ),
        compiler_params=pltpu.CompilerParams(
            dimension_semantics=("parallel",)),                        # megacore / 2 TCs on v7x
    )(x3d, wt, b_row, A_cat, Gcat)


# --------------------------- parameter prep (once) ------------------------

def prepare_params(lin_w, lin_b, conv_w, H):
    """Fold the linear transpose and the conv's im2col structure into constants.

    A_cat is per-sample (no O(N^2) batch coupling); Gcat concatenates the KW
    column-gather matrices so the epilogue is a single matmul.
    """
    wt = lin_w.T                                   # (100, 200)
    b_row = lin_b.reshape(1, -1)                   # (1, 200)

    cout, cin, kh_n, kw_n = conv_w.shape
    W = lin_w.shape[0]                             # 200 (conv input width)
    ho_n = (H + 2 * PAD - kh_n) // STRIDE + 1      # 3
    wo_n = (W + 2 * PAD - kw_n) // STRIDE + 1      # 40
    R = cout * ho_n                                # 9
    M1 = cin * H                                   # 48

    # Gcat[c, kw*Wo + wo] = 1  iff  c == STRIDE*wo + kw - PAD
    # (out-of-range c -> zero column = width padding)
    c = jnp.arange(W).reshape(W, 1, 1)
    kw = jnp.arange(kw_n).reshape(1, kw_n, 1)
    wo = jnp.arange(wo_n).reshape(1, 1, wo_n)
    Gcat = (c == (STRIDE * wo + kw - PAD)).astype(jnp.float32).reshape(W, kw_n * wo_n)

    # A_cat[kw*R + co*Ho + ho, ci*H + h] =
    #     conv_w[co, ci, h - STRIDE*ho + PAD, kw]   if 0 <= h - STRIDE*ho + PAD < KH else 0
    kwi = jnp.arange(kw_n).reshape(kw_n, 1, 1, 1, 1)
    co = jnp.arange(cout).reshape(1, cout, 1, 1, 1)
    ho = jnp.arange(ho_n).reshape(1, 1, ho_n, 1, 1)
    ci = jnp.arange(cin).reshape(1, 1, 1, cin, 1)
    h = jnp.arange(H).reshape(1, 1, 1, 1, H)
    kh = h - STRIDE * ho + PAD
    valid = (kh >= 0) & (kh < kh_n)

    shape5 = (kw_n, cout, ho_n, cin, H)
    co_b = jnp.broadcast_to(co, shape5)
    ci_b = jnp.broadcast_to(ci, shape5)
    kh_b = jnp.broadcast_to(jnp.clip(kh, 0, kh_n - 1), shape5)
    kw_b = jnp.broadcast_to(kwi, shape5)
    wvals = conv_w[co_b, ci_b, kh_b, kw_b]                              # (KW, Cout, Ho, Cin, H)
    A_cat = jnp.where(jnp.broadcast_to(valid, shape5), wvals, 0.0)
    A_cat = A_cat.reshape(kw_n * R, M1)                                 # (KW*R, M1)

    return wt, b_row, A_cat, Gcat, (cout, ho_n, wo_n)


# ------------------------------- forward ----------------------------------

def model_forward(x, wt, b_row, A_cat, Gcat, meta):
    """x: (N, 3, H, 100) float32 -> (N, 3, Ho, Wo) float32."""
    N, C, H, Kin = x.shape
    cout, ho_n, wo_n = meta
    x3d = x.reshape(N, C * H, Kin)                                      # free reshape
    out3d = fused_forward(x3d, wt, b_row, A_cat, Gcat, cout * ho_n, wo_n)
    return out3d.reshape(N, cout, ho_n, wo_n)                           # free reshape


def reference_forward(x, lin_w, lin_b, conv_w):
    y = jnp.maximum(jnp.einsum("nchk,ok->ncho", x, lin_w) + lin_b, 0.0)
    out = jax.lax.conv_general_dilated(
        y, conv_w, window_strides=(STRIDE, STRIDE),
        padding=((PAD, PAD), (PAD, PAD)),
        dimension_numbers=("NCHW", "OIHW", "NCHW"))
    return jnp.maximum(out, 0.0)


if __name__ == "__main__":
    key = jax.random.PRNGKey(0)
    k1, k2, k3, k4 = jax.random.split(key, 4)

    # Deterministic parameter init (PyTorch-style uniform bounds).
    lin_in, lin_out = 100, 200
    lim_lin = 1.0 / jnp.sqrt(lin_in)
    lin_w = jax.random.uniform(k1, (lin_out, lin_in), jnp.float32, -lim_lin, lim_lin)
    lin_b = jax.random.uniform(k2, (lin_out,), jnp.float32, -lim_lin, lim_lin)

    cin, cout = 3, 3
    lim_conv = 1.0 / jnp.sqrt(cin * KH * KW)
    conv_w = jax.random.uniform(k3, (cout, cin, KH, KW), jnp.float32, -lim_conv, lim_conv)

    # Small input consistent with the module: (N=2, C=3, H=16, feat=100).
    N, C, H = 2, 3, 16
    x = jax.random.normal(k4, (N, C, H, lin_in), jnp.float32)

    # One-time weight prep (outside the hot path).
    wt, b_row, A_cat, Gcat, meta = prepare_params(lin_w, lin_b, conv_w, H)
    wt, b_row, A_cat, Gcat = jax.block_until_ready((wt, b_row, A_cat, Gcat))

    out = jax.block_until_ready(model_forward(x, wt, b_row, A_cat, Gcat, meta))

    ref = jax.block_until_ready(reference_forward(x, lin_w, lin_b, conv_w))
    assert out.shape == ref.shape, (out.shape, ref.shape)
    assert jnp.allclose(out, ref, atol=1e-4, rtol=1e-4), float(jnp.max(jnp.abs(out - ref)))

    print("KERNEL_OK")
</pallas_src>

<mosaic_0001>
module attributes {stable_mosaic.version = 11 : i64} {
  func.func @kernel(%arg0: i32, %arg1: memref<1x48x100xf32, #tpu.memory_space<vmem>>, %arg2: memref<100x200xf32, #tpu.memory_space<vmem>>, %arg3: memref<1x200xf32, #tpu.memory_space<vmem>>, %arg4: memref<45x48xf32, #tpu.memory_space<vmem>>, %arg5: memref<200x200xf32, #tpu.memory_space<vmem>>, %arg6: memref<1x9x40xf32, #tpu.memory_space<vmem>>) attributes {dimension_semantics = [#tpu.dimension_semantics<parallel>], iteration_bounds = array<i64: 2>, scalar_prefetch = 0 : i64, scratch_operands = 0 : i64, tpu.core_type = #tpu.core_type<tc>, window_params = [{transform_indices = @transform_0, window_bounds = array<i64: 1, 48, 100>}, {pipeline_mode = #tpu.pipeline_mode<synchronous>, transform_indices = @transform_1, window_bounds = array<i64: 100, 200>}, {pipeline_mode = #tpu.pipeline_mode<synchronous>, transform_indices = @transform_2, window_bounds = array<i64: 1, 200>}, {pipeline_mode = #tpu.pipeline_mode<synchronous>, transform_indices = @transform_3, window_bounds = array<i64: 45, 48>}, {pipeline_mode = #tpu.pipeline_mode<synchronous>, transform_indices = @transform_4, window_bounds = array<i64: 200, 200>}, {transform_indices = @transform_5, window_bounds = array<i64: 1, 9, 40>}]} {
    %c0 = arith.constant 0 : index
    %c0_0 = arith.constant 0 : index
    %c0_1 = arith.constant 0 : index
    %0 = vector.load %arg1[%c0, %c0_0, %c0_1] : memref<1x48x100xf32, #tpu.memory_space<vmem>>, vector<1x48x100xf32>
    %1 = vector.shape_cast %0 : vector<1x48x100xf32> to vector<48x100xf32>
    %c0_2 = arith.constant 0 : index
    %c0_3 = arith.constant 0 : index
    %2 = vector.load %arg2[%c0_2, %c0_3] : memref<100x200xf32, #tpu.memory_space<vmem>>, vector<100x200xf32>
    %cst = arith.constant dense<0.000000e+00> : vector<48x200xf32>
    %3 = tpu.matmul %1, %2, %cst {dimension_numbers = #tpu.dot_dimension_numbers<[1], [0], [0], [1], [0, 0, 1, 1], [], []>} : vector<48x100xf32>, vector<100x200xf32>, vector<48x200xf32> -> vector<48x200xf32>
    %c0_4 = arith.constant 0 : index
    %c0_5 = arith.constant 0 : index
    %4 = vector.load %arg3[%c0_4, %c0_5] : memref<1x200xf32, #tpu.memory_space<vmem>>, vector<1x200xf32>
    %5 = vector.broadcast %4 : vector<1x200xf32> to vector<48x200xf32>
    %6 = arith.addf %3, %5 : vector<48x200xf32>
    %cst_6 = arith.constant 0.000000e+00 : f32
    %7 = vector.broadcast %cst_6 : f32 to vector<48x200xf32>
    %8 = arith.maximumf %6, %7 : vector<48x200xf32>
    %c0_7 = arith.constant 0 : index
    %c0_8 = arith.constant 0 : index
    %9 = vector.load %arg4[%c0_7, %c0_8] : memref<45x48xf32, #tpu.memory_space<vmem>>, vector<45x48xf32>
    %cst_9 = arith.constant dense<0.000000e+00> : vector<45x200xf32>
    %10 = tpu.matmul %9, %8, %cst_9 {dimension_numbers = #tpu.dot_dimension_numbers<[1], [0], [0], [1], [0, 0, 1, 1], [], []>} : vector<45x48xf32>, vector<48x200xf32>, vector<45x200xf32> -> vector<45x200xf32>
    %c0_10 = arith.constant 0 : index
    %c0_11 = arith.constant 0 : index
    %11 = vector.load %arg5[%c0_10, %c0_11] : memref<200x200xf32, #tpu.memory_space<vmem>>, vector<200x200xf32>
    %cst_12 = arith.constant dense<0.000000e+00> : vector<45x200xf32>
    %12 = tpu.matmul %10, %11, %cst_12 {dimension_numbers = #tpu.dot_dimension_numbers<[1], [0], [0], [1], [0, 0, 1, 1], [], []>} : vector<45x200xf32>, vector<200x200xf32>, vector<45x200xf32> -> vector<45x200xf32>
    %13 = vector.extract_strided_slice %12 {offsets = [0, 0], sizes = [9, 40], strides = [1, 1]} : vector<45x200xf32> to vector<9x40xf32>
    %14 = vector.extract_strided_slice %12 {offsets = [9, 40], sizes = [9, 40], strides = [1, 1]} : vector<45x200xf32> to vector<9x40xf32>
    %15 = arith.addf %13, %14 : vector<9x40xf32>
    %16 = vector.extract_strided_slice %12 {offsets = [18, 80], sizes = [9, 40], strides = [1, 1]} : vector<45x200xf32> to vector<9x40xf32>
    %17 = arith.addf %15, %16 : vector<9x40xf32>
    %18 = vector.extract_strided_slice %12 {offsets = [27, 120], sizes = [9, 40], strides = [1, 1]} : vector<45x200xf32> to vector<9x40xf32>
    %19 = arith.addf %17, %18 : vector<9x40xf32>
    %20 = vector.extract_strided_slice %12 {offsets = [36, 160], sizes = [9, 40], strides = [1, 1]} : vector<45x200xf32> to vector<9x40xf32>
    %21 = arith.addf %19, %20 : vector<9x40xf32>
    %cst_13 = arith.constant 0.000000e+00 : f32
    %22 = vector.broadcast %cst_13 : f32 to vector<9x40xf32>
    %23 = arith.maximumf %21, %22 : vector<9x40xf32>
    %c0_14 = arith.constant 0 : index
    %c0_15 = arith.constant 0 : index
    %c0_16 = arith.constant 0 : index
    %24 = vector.load %arg6[%c0_14, %c0_15, %c0_16] : memref<1x9x40xf32, #tpu.memory_space<vmem>>, vector<1x9x40xf32>
    %25 = vector.shape_cast %24 : vector<1x9x40xf32> to vector<9x40xf32>
    %26 = vector.shape_cast %23 : vector<9x40xf32> to vector<1x9x40xf32>
    tpu.vector_store %arg6[%c0_14, %c0_15, %c0_16], %26 {strides = array<i32>} : memref<1x9x40xf32, #tpu.memory_space<vmem>>, vector<1x9x40xf32>,
    return
  }
  func.func @transform_0(%arg0: i32) -> (i32, i32, i32) {
    %c0_i32 = arith.constant 0 : i32
    %c0_i32_0 = arith.constant 0 : i32
    %c0_i32_1 = arith.constant 0 : i32
    return %arg0, %c0_i32, %c0_i32_0 : i32, i32, i32
  }
  func.func @transform_1(%arg0: i32) -> (i32, i32) {
    %c0_i32 = arith.constant 0 : i32
    %c0_i32_0 = arith.constant 0 : i32
    %c0_i32_1 = arith.constant 0 : i32
    return %c0_i32, %c0_i32_0 : i32, i32
  }
  func.func @transform_2(%arg0: i32) -> (i32, i32) {
    %c0_i32 = arith.constant 0 : i32
    %c0_i32_0 = arith.constant 0 : i32
    %c0_i32_1 = arith.constant 0 : i32
    return %c0_i32, %c0_i32_0 : i32, i32
  }
  func.func @transform_3(%arg0: i32) -> (i32, i32) {
    %c0_i32 = arith.constant 0 : i32
    %c0_i32_0 = arith.constant 0 : i32
    %c0_i32_1 = arith.constant 0 : i32
    return %c0_i32, %c0_i32_0 : i32, i32
  }
  func.func @transform_4(%arg0: i32) -> (i32, i32) {
    %c0_i32 = arith.constant 0 : i32
    %c0_i32_0 = arith.constant 0 : i32
    %c0_i32_1 = arith.constant 0 : i32
    return %c0_i32, %c0_i32_0 : i32, i32
  }
  func.func @transform_5(%arg0: i32) -> (i32, i32, i32) {
    %c0_i32 = arith.constant 0 : i32
    %c0_i32_0 = arith.constant 0 : i32
    %c0_i32_1 = arith.constant 0 : i32
    return %arg0, %c0_i32, %c0_i32_0 : i32, i32, i32
  }
}

</mosaic_0001>

<bundles_post_ra>
// kernel: tpu_custom_call.1
= control target key start
LH: loop header
LB: loop body
LE: loop exit
PB: predicated region body
PF: predicated region fallthrough
CT: control target
= control target key end

     0   :  { %10 = vsyncpa [#allocation3], 0  ;;  %s1615_s0 = inlined_call_operand.hbm [shape: f32[2,48,100], index: 0, kind: input, shape index: {}]   ;;  %s1616_s1 = inlined_call_operand.vmem [shape: f32[100,200], index: 1, kind: input, shape index: {}]   ;;  %s1617_s2 = inlined_call_operand.vmem [shape: f32[1,200], index: 2, kind: input, shape index: {}]   ;;  %s1618_s3 = inlined_call_operand.hbm [shape: f32[45,48], index: 3, kind: input, shape index: {}]   ;;  %s1619_s4 = inlined_call_operand.vmem [shape: f32[200,200], index: 4, kind: input, shape index: {}]   ;;  %s1620_s5 = inlined_call_operand.vmem [shape: f32[2,9,40], index: 5, kind: output, shape index: {}]  }
   0x1   :  { %12 = vsyncpa [#allocation3 + $0x1], 0 }
   0x2   :  { %13 = vsyncpa [#allocation5], 0  ;;  %s1195_s18 = smov 0   ;;  %s1197_s19 = smov 0  }
   0x3   :  { %s1199_s20 = smov 0   ;;  %s1201_s21 = smov 0  }
   0x4 LB: > { %s1214_s22 = sadd.s32 4294967295, %s1154_s21   ;;  %p39_p0 = scmp.ne.s32.totalorder %s1146_s19, %s1142_s18  ;;  %s1154_s21 = sphi %s1201_s21, %s1636_s21   ;;  %s1150_s20 = sphi %s1199_s20, %s1635_s20   ;;  %s1146_s19 = sphi %s1197_s19, %s1634_s19   ;;  %s1142_s18 = sphi %s1195_s18, %s1633_s18  }
   0x5   : > { %p1621_p1 = scmp.eq.s32.totalorder %s1214_s22, 0  ;;  %p883_p2 = scmp.ge.s32.totalorder %s1154_s21, 1 }
   0x6   : > { %p160_p3 = scmp.lt.s32.totalorder %s1154_s21, 3  ;;  %s1156_s25 = smov [#allocation4]  }
   0x7   : > { %p1222_p4 = por %p1621_p1, %p39_p0  ;;  %s178_s26 = sshll.u32 %s1156_s25, 4  ;;  %s179_s26 = int_to_ptr.vmem [resolvable:$true] %s178_s26 }
   0x8   : > { %p1226_p5 = pnand %p883_p2, %p160_p3  ;;  %s1239_s28 = sadd.s32 1, %s1154_s21  }
   0x9   : > { %s1624_s23 = scalar_select %p1222_p4, 1, 0 }
   0xa   : > { %s1625_s24 = scalar_select %p1226_p5, 1, 0 }
   0xb   : > { %p1007_p6 = pneg %p1226_p5  ;;  %s26_s29 = sadd.s32 1, %s1150_s20 }
   0xc   : > { %s23_s30 = ssub.s32 %s1154_s21, %s1239_s28  ;;  %s1058_s8 = scalar_lea.hbm %s1618_s3, 768 }
   0xd   : > { %p1234_p7 = pnand %p1007_p6, %p1621_p1  ;;  %p1059_p8 = scmp.ne.s32.totalorder %s1618_s3, %s1058_s8 }
   0xe   : > { %p1065_p12 = scmp.lt.u32.totalorder %s1058_s8, %s1618_s3 }
   0xf   : > { %p1060_p9 = pneg %p1234_p7 }
  0x11   : > { %p1061_p10 = pnand %p1060_p9, %p1059_p8 }
  0x13   : > { %p1062_p11 = pneg %p1061_p10 }
  0x15   : > { %p1067_p13 = pnand %p1065_p12, %p1062_p11 }
  0x17   : > { %1070 = shalt.err (!%p1067_p13)
}
  0x18   : > { %s1071_s13 = scalar_lea.vmem %s179_s26, 768  ;;  %p1079_p6 = scmp.lt.s32.totalorder %s179_s26, %s179_s26 }
  0x19   : > { %p1072_p0 = scmp.ne.s32.totalorder %s179_s26, %s1071_s13  ;;  %p1080_p1 = scmp.lt.s32.totalorder %s1071_s13, %s1071_s13 }
  0x1b   : > { %p1074_p2 = pnand %p1072_p0, %p1060_p9  ;;  %p1081_p4 = por %p1080_p1, %p1079_p6 }
  0x1d   : > { %p1075_p3 = pneg %p1074_p2 }
  0x1f   : > { %p1082_p5 = pnand %p1081_p4, %p1075_p3 }
  0x21   : > { %1085 = shalt.err (!%p1082_p5)
}
  0x22   : > { %s1157_s14 = smov 128   ;;  %s1158_s15 = smov 8  }
  0x23   : > { %1010 = dma.hbm_to_vmem [thread:$0]  (!%p1234_p7), %s1618_s3, 768, %s179_s26, [#allocation5], %s1157_s14, %s1157_s14, %s1158_s15  }
  0x24   : > { %p24_p1 = scmp.eq.s32.totalorder %s23_s30, 0  ;;  %p33_p4 = scmp.ne.s32.totalorder %s1150_s20, %s1146_s19 }
  0x25   : > { %p34_p5 = scmp.eq.s32.totalorder %s1154_s21, 0  ;;  %p1016_p8 = scmp.lt.s32.totalorder %s1154_s21, 2 }
  0x26   : > { %s1268_s18 = scalar_select %p24_p1, %s1150_s20, %s26_s29  }
  0x27   : > { %p35_p9 = por %p34_p5, %p33_p4  ;;  %s195_s25 = sand.u32 1, %s1150_s20  }
  0x28   : > { %s998_s6 = smul.u32 48, %s195_s25  ;;  %s1091_s13 = scalar_lea.hbm %s1615_s0, 1536 }
  0x29   : > { %s999_s7 = smul.u32 768, %s1154_s21  ;;  %p1272_p10 = pnand %p1016_p8, %p35_p9 }
  0x2a   : > { %s199_s29 = scalar_lea.vmem [#allocation2], %s998_s6  ;;  %s1283_s21 = scalar_lea.sflag [#allocation3], %s195_s25 }
  0x2b   : > { %s1279_s26 = scalar_lea.hbm %s1615_s0, %s999_s7  ;;  %s206_s30 = sshll.u32 %s199_s29, 4  ;;  %s1281_s30 = int_to_ptr.vmem [resolvable:$true] %s206_s30 }
  0x2c   : > { %s1086_s10 = scalar_lea.hbm %s1279_s26, 768  ;;  %p1088_p11 = pneg %p1272_p10 }
  0x2d   : > { %p1087_p7 = scmp.ne.s32.totalorder %s1279_s26, %s1086_s10  ;;  %p1092_p0 = scmp.lt.u32.totalorder %s1279_s26, %s1615_s0 }
  0x2e   : > { %p1093_p2 = scmp.lt.u32.totalorder %s1091_s13, %s1086_s10  ;;  %p1095_p6 = scmp.lt.u32.totalorder %s1086_s10, %s1279_s26 }
  0x2f   : > { %p1089_p12 = pnand %p1088_p11, %p1087_p7 }
  0x30   : > { %p1094_p3 = por %p1093_p2, %p1092_p0 }
  0x31   : > { %p1090_p13 = pneg %p1089_p12 }
  0x32   : > { %p1096_p1 = por %p1095_p6, %p1094_p3 }
  0x34   : > { %p1097_p4 = pnand %p1096_p1, %p1090_p13 }
  0x36   : > { %1100 = shalt.err (!%p1097_p4)
}
  0x37   : > { %s1101_s25 = scalar_lea.vmem %s1281_s30, 768  ;;  %s1159_s6 = smov [#allocation2]  }
  0x38   : > { %p1102_p5 = scmp.ne.s32.totalorder %s1281_s30, %s1101_s25  ;;  %s1106_s7 = sshll.u32 %s1159_s6, 4  ;;  %s1107_s7 = int_to_ptr.vmem [resolvable:$false] %s1106_s7 }
  0x39   : > { %s1108_s27 = scalar_lea.vmem %s1107_s7, 1536  ;;  %p1109_p7 = scmp.lt.s32.totalorder %s1281_s30, %s1107_s7 }
  0x3a   : > { %p1104_p8 = pnand %p1102_p5, %p1088_p11  ;;  %p1110_p12 = scmp.lt.s32.totalorder %s1108_s27, %s1101_s25 }
  0x3c   : > { %p1105_p9 = pneg %p1104_p8  ;;  %p1111_p0 = por %p1110_p12, %p1109_p7 }
  0x3e   : > { %p1112_p2 = pnand %p1111_p0, %p1105_p9 }
  0x40   : > { %1115 = shalt.err (!%p1112_p2)
}
  0x41   : > { %1014 = dma.hbm_to_vmem [thread:$0]  (!%p1272_p10), %s1279_s26, 768, %s1281_s30, %s1283_s21, %s1157_s14, %s1157_s14, %s1158_s15  }
  0x42   : > { %p1628_p11 = scmp.ne.s32.totalorder %s1625_s24, 0 }
  0x43   : > { %s220_s9 = sand.u32 (!%p1628_p11), 1, %s1146_s19   ;;  %p1629_p13 = scmp.ne.s32.totalorder (!%p1628_p11), %s1624_s23, 0 }
  0x44   : > { %218 = sbr.rel (%p1628_p11) target bundleno = 927 (0x39f), region = 40  ;;  %s221_s10 = scalar_lea.sflag (!%p1628_p11), [#allocation3], %s220_s9 }
  0x45   : > { %s1000_s29 = smul.u32 (!%p1628_p11), 48, %s220_s9 }
  0x47   : > { %s1317_s11 = scalar_lea.vmem (!%p1628_p11), [#allocation2], %s1000_s29 }
  0x4b   : > { %1133 = dma.done.wait (%p1629_p13), %s221_s10, 768  }
  0x4c   : > { %1135 = vsyncadd (%p1629_p13), %s221_s10, 4294966528  ;;  %p1630_p3 = scmp.eq.s32.totalorder %s1214_s22, 0 }
  0x4e   : > { %1137 = dma.done.wait (%p1630_p3), [#allocation5], 768   ;;  %p1631_p10 = pmov %p1630_p3 }
  0x4f   : > { %v1160_v0 = vmov 0.0   ;;  %v267_v1 = vld [vmem:[%s1616_s1 + $0x8] sm:$0xff]  ;;  %v269_v2 = vld [vmem:[%s1616_s1 + $0x18] sm:$0xff]  ;;  %v266_v3 = vld [vmem:[%s1616_s1] sm:$0xff]  ;;  %vm323_vm0 = vcmask 1043456   ;;  %vm304_vm1 = vcmask 818176  }
  0x50   : > { %1139 = vsyncadd (%p1631_p10), [#allocation5], 4294966528  ;;  %394 = vmatprep.mubr.f32.mxu0 %v1160_v0  ;;  %v914_v4 = vpack.c.bf16 %v269_v2, %v267_v1  ;;  %v268_v5 = vld [vmem:[%s1616_s1 + $0x10] sm:$0xff]  ;;  %v271_v6 = vld [vmem:[%s1616_s1 + $0x28] sm:$0xff]  ;;  %vm449_vm2 = vcmask 392192   ;;  %vm619_vm3 = vcmask 588800  }
  0x51   : > { %v273_v7 = vld [vmem:[%s1616_s1 + $0x38] sm:$0xff]  ;;  %v916_v8 = vpack.c.bf16 %v268_v5, %v266_v3  ;;  %v270_v10 = vld [vmem:[%s1616_s1 + $0x20] sm:$0xff]  ;;  %v272_v11 = vld [vmem:[%s1616_s1 + $0x30] sm:$0xff]  ;;  %vm737_vm4 = vcmask 1046528   ;;  %s1161_s9 = smov 88   ;;  %vm750_vm5 = vcmask 1045504  }
  0x52   : > { %v918_v9 = vpack.c.bf16 %v273_v7, %v271_v6  ;;  %v275_v12 = vld [vmem:[%s1616_s1 + $0x48] sm:$0xff]  ;;  %915 = vmatprep.subr.bf16.mxu0 %v914_v4  ;;  %v277_v13 = vld [vmem:[%s1616_s1 + $0x58] sm:$0xff]  ;;  %v920_v14 = vpack.c.bf16 %v272_v11, %v270_v10  ;;  %v274_v16 = vld [vmem:[%s1616_s1 + $0x40] sm:$0xff]  ;;  %s1162_s29 = smov 48   ;;  %vm765_vm6 = vcmask 1044480   ;;  %s1163_s10 = smov 8  }
  0x53   : > { %917 = vmatpush1.bf16.msra.mxu0 %v916_v8  ;;  %v922_v15 = vpack.c.bf16 %v277_v13, %v275_v12  ;;  %v276_v17 = vld [vmem:[%s1616_s1 + $0x50] sm:$0xff]  ;;  %v279_v18 = vld [vmem:[%s1616_s1 + $0x68] sm:$0xff]  ;;  %v281_v19 = vld [vmem:[%s1616_s1 + $0x78] sm:$0xff]  ;;  %s1164_s24 = smov 96   ;;  %p255_p6 = scmp.lt.s32.totalorder %s1214_s22, 1  ;;  %vm780_vm7 = vcmask 64512  }
  0x54   : > { %919 = vmatprep.subr.bf16.mxu0 %v918_v9  ;;  %v924_v20 = vpack.c.bf16 %v276_v17, %v274_v16  ;;  %v926_v21 = vpack.c.bf16 %v281_v19, %v279_v18  ;;  %v278_v22 = vld [vmem:[%s1616_s1 + $0x60] sm:$0xff]  ;;  %v280_v23 = vld [vmem:[%s1616_s1 + $0x70] sm:$0xff]  ;;  %v283_v24 = vld [vmem:[%s1616_s1 + $0x88] sm:$0xff]  ;;  %vm801_vm8 = vcmask 326656   ;;  %vm803_vm9 = vcmask 319488  }
  0x55   : > { %v285_v25 = vld [vmem:[%s1616_s1 + $0x98] sm:$0xff]  ;;  %v928_v26 = vpack.c.bf16 %v280_v23, %v278_v22  ;;  %v282_v28 = vld [vmem:[%s1616_s1 + $0x80] sm:$0xff]  ;;  %v284_v29 = vld [vmem:[%s1616_s1 + $0x90] sm:$0xff]  ;;  %s1638_s22 = smov (!%p255_p6, %s1214_s22), 1 }
  0x56   : > { %v930_v27 = vpack.c.bf16 %v285_v25, %v283_v24  ;;  %v287_v30 = vld [vmem:[%s1616_s1 + $0xa8] sm:$0xff]  ;;  %v289_v31 = vld [vmem:[%s1616_s1 + $0xb8] sm:$0xff]  ;;  %v932_v32 = vpack.c.bf16 %v284_v29, %v282_v28  ;;  %v286_v34 = vld [vmem:[%s1616_s1 + $0xa0] sm:$0xff]  ;;  %s913_s14 = sshll.u32 %s1638_s22, 4 }
  0x57   : > { %921 = vmatpush1.bf16.msra.mxu0 %v920_v14  ;;  %v934_v33 = vpack.c.bf16 %v289_v31, %v287_v30  ;;  %v288_v35 = vld [vmem:[%s1616_s1 + $0xb0] sm:$0xff]  ;;  %v291_v37 = vld [vmem:[%s1616_s1 + $0xc8] sm:$0xf]  ;;  %v290_v38 = vld [vmem:[%s1616_s1 + $0xc0] sm:$0xf]  ;;  %s259_s8 = scalar_lea.vmem %s1620_s5, %s913_s14 }
  0x58   : > { %923 = vmatprep.subr.bf16.mxu0 %v922_v15  ;;  %v936_v36 = vpack.c.bf16 %v288_v35, %v286_v34  ;;  %v260_v39 = vld [vmem:[%s1317_s11] sm:$0xff]  ;;  %v261_v40 = vld [vmem:[%s1317_s11 + $0x8] sm:$0xff]  ;;  %v262_v41 = vld [vmem:[%s1317_s11 + $0x10] sm:$0xff] }
  0x59   : > { %v263_v42 = vld [vmem:[%s1317_s11 + $0x18] sm:$0xff]  ;;  %v264_v43 = vld [vmem:[%s1317_s11 + $0x20] sm:$0xff]  ;;  %v265_v44 = vld [vmem:[%s1317_s11 + $0x28] sm:$0xff] }
  0x5a   : > { %v570_v45 = vld [vmem:[%s1619_s4 + $0x8] sm:$0xff]  ;;  %v572_v46 = vld [vmem:[%s1619_s4 + $0x18] sm:$0xff]  ;;  %v569_v47 = vld [vmem:[%s1619_s4] sm:$0xff] }
  0x5b   : > { %925 = vmatpush1.bf16.msra.mxu0 %v924_v20  ;;  %v950_v48 = vpack.c.bf16 %v572_v46, %v570_v45  ;;  %v571_v49 = vld [vmem:[%s1619_s4 + $0x10] sm:$0xff]  ;;  %v574_v50 = vld [vmem:[%s1619_s4 + $0x28] sm:$0xff]  ;;  %v576_v51 = vld [vmem:[%s1619_s4 + $0x38] sm:$0xff] }
  0x5c   : > { %927 = vmatprep.subr.bf16.mxu0 %v926_v21  ;;  %v952_v52 = vpack.c.bf16 %v571_v49, %v569_v47  ;;  %v954_v53 = vpack.c.bf16 %v576_v51, %v574_v50  ;;  %v573_v54 = vld [vmem:[%s1619_s4 + $0x20] sm:$0xff]  ;;  %v575_v55 = vld [vmem:[%s1619_s4 + $0x30] sm:$0xff]  ;;  %v578_v56 = vld [vmem:[%s1619_s4 + $0x48] sm:$0xff] }
  0x5d   : > { %951 = vmatprep.subr.bf16.mxu1 %v950_v48  ;;  %v580_v57 = vld [vmem:[%s1619_s4 + $0x58] sm:$0xff]  ;;  %v956_v58 = vpack.c.bf16 %v575_v55, %v573_v54  ;;  %v577_v60 = vld [vmem:[%s1619_s4 + $0x40] sm:$0xff]  ;;  %v579_v61 = vld [vmem:[%s1619_s4 + $0x50] sm:$0xff]  ;;  %v294_v54 = vlaneseq }
  0x5e   : > { %953 = vmatpush1.bf16.msra.mxu1 %v952_v52  ;;  %v958_v59 = vpack.c.bf16 %v580_v57, %v578_v56  ;;  %v582_v62 = vld [vmem:[%s1619_s4 + $0x68] sm:$0xff]  ;;  %v584_v63 = vld [vmem:[%s1619_s4 + $0x78] sm:$0xff]  ;;  %v960_v1 = vpack.c.bf16 %v579_v61, %v577_v60  ;;  %v581_v3 = vld [vmem:[%s1619_s4 + $0x60] sm:$0xff] }
  0x5f   : > { %929 = vmatpush1.bf16.msra.mxu0 %v928_v26  ;;  %955 = vmatprep.subr.bf16.mxu1 %v954_v53  ;;  %v962_v2 = vpack.c.bf16 %v584_v63, %v582_v62  ;;  %v583_v4 = vld [vmem:[%s1619_s4 + $0x70] sm:$0xff]  ;;  %v586_v5 = vld [vmem:[%s1619_s4 + $0x88] sm:$0xff]  ;;  %v588_v6 = vld [vmem:[%s1619_s4 + $0x98] sm:$0xff]  ;;  %v295_v55 = vshrl.u32 %v294_v54, 7 }
  0x60   : > { %931 = vmatprep.subr.bf16.mxu0 %v930_v27  ;;  %v964_v7 = vpack.c.bf16 %v583_v4, %v581_v3  ;;  %v966_v8 = vpack.c.bf16 %v588_v6, %v586_v5  ;;  %v585_v9 = vld [vmem:[%s1619_s4 + $0x80] sm:$0xff]  ;;  %v587_v10 = vld [vmem:[%s1619_s4 + $0x90] sm:$0xff]  ;;  %v590_v11 = vld [vmem:[%s1619_s4 + $0xa8] sm:$0xff] }
  0x61   : > { %v592_v12 = vld [vmem:[%s1619_s4 + $0xb8] sm:$0xff]  ;;  %v968_v13 = vpack.c.bf16 %v587_v10, %v585_v9  ;;  %v589_v15 = vld [vmem:[%s1619_s4 + $0xa0] sm:$0xff]  ;;  %v591_v16 = vld [vmem:[%s1619_s4 + $0xb0] sm:$0xff]  ;;  %v296_v56 = vsub.s32 0, %v295_v55 }
  0x62   : > { %957 = vmatpush1.bf16.msra.mxu1 %v956_v58  ;;  %v970_v14 = vpack.c.bf16 %v592_v12, %v590_v11  ;;  %v594_v17 = vld [vmem:[%s1619_s4 + $0xc8] sm:$0xff]  ;;  %v596_v18 = vld [vmem:[%s1619_s4 + $0xd8] sm:$0xff]  ;;  %v972_v19 = vpack.c.bf16 %v591_v16, %v589_v15  ;;  %v593_v21 = vld [vmem:[%s1619_s4 + $0xc0] sm:$0xff]  ;;  %v300_v58 = vsub.s32 1, %v295_v55 }
  0x63   : > { %933 = vmatpush1.bf16.msra.mxu0 %v932_v32  ;;  %959 = vmatprep.subr.bf16.mxu1 %v958_v59  ;;  %v974_v20 = vpack.c.bf16 %v596_v18, %v594_v17  ;;  %v595_v22 = vld [vmem:[%s1619_s4 + $0xd0] sm:$0xff]  ;;  %v598_v23 = vld [vmem:[%s1619_s4 + $0xe8] sm:$0xff]  ;;  %v600_v24 = vld [vmem:[%s1619_s4 + $0xf8] sm:$0xff] }
  0x64   : > { %935 = vmatprep.subr.bf16.mxu0 %v934_v33  ;;  %v976_v25 = vpack.c.bf16 %v595_v22, %v593_v21  ;;  %v978_v26 = vpack.c.bf16 %v600_v24, %v598_v23  ;;  %v597_v27 = vld [vmem:[%s1619_s4 + $0xe0] sm:$0xff]  ;;  %v599_v28 = vld [vmem:[%s1619_s4 + $0xf0] sm:$0xff]  ;;  %v602_v29 = vld [vmem:[%s1619_s4 + $0x108] sm:$0xff] }
  0x65   : > { %v604_v30 = vld [vmem:[%s1619_s4 + $0x118] sm:$0xff]  ;;  %v980_v31 = vpack.c.bf16 %v599_v28, %v597_v27  ;;  %v601_v33 = vld [vmem:[%s1619_s4 + $0x100] sm:$0xff]  ;;  %v603_v34 = vld [vmem:[%s1619_s4 + $0x110] sm:$0xff] }
  0x66   : > { %961 = vmatpush1.bf16.msra.mxu1 %v960_v1  ;;  %v982_v32 = vpack.c.bf16 %v604_v30, %v602_v29  ;;  %v606_v35 = vld [vmem:[%s1619_s4 + $0x128] sm:$0xff]  ;;  %v609_v45 = vld [vmem:[%s1619_s4 + $0x140] sm:$0xff]  ;;  %v611_v46 = vld [vmem:[%s1619_s4 + $0x150] sm:$0xff] }
  0x67   : > { %937 = vmatpush1.bf16.msra.mxu0 %v936_v36  ;;  %963 = vmatprep.subr.bf16.mxu1 %v962_v2  ;;  %v608_v36 = vld [vmem:[%s1619_s4 + $0x138] sm:$0xff]  ;;  %v614_v47 = vld [vmem:[%s1619_s4 + $0x168] sm:$0xff]  ;;  %v992_v49 = vpack.c.bf16 %v611_v46, %v609_v45  ;;  %v613_v51 = vld [vmem:[%s1619_s4 + $0x160] sm:$0xff] }
  0x68   : > { %891 = vmatprep.subr.msk.mxu0 %vm323_vm0, %v291_v37  ;;  %v984_v37 = vpack.c.bf16 %v603_v34, %v601_v33  ;;  %v616_v48 = vld [vmem:[%s1619_s4 + $0x178] sm:$0xff]  ;;  %v615_v52 = vld [vmem:[%s1619_s4 + $0x170] sm:$0xff]  ;;  %v292_v57 = vld [vmem:[%s1617_s2] sm:$0x3] }
  0x69   : > { %v994_v50 = vpack.c.bf16 %v616_v48, %v614_v47  ;;  %v996_v53 = vpack.c.bf16 %v615_v52, %v613_v51  ;;  %v297_v59 = vrot.slane %v292_v57, %v296_v56  ;;  %v301_v61 = vrot.slane %v292_v57, %v300_v58  ;;  %v448_v45 = vld [vmem:[#allocation4 + $0x28] sm:$0x1f]  ;;  %v617_v47 = vld [vmem:[%s1619_s4 + $0x180] sm:$0xff] }
  0x6a   : > { %965 = vmatpush1.bf16.msra.mxu1 %v964_v7  ;;  %v618_v46 = vld [vmem:[%s1619_s4 + $0x188] sm:$0xff] }
  0x6b   : > { %892 = vmatpush1.msk.msra.mxu0 %vm323_vm0, %v290_v38  ;;  %967 = vmatprep.subr.bf16.mxu1 %v966_v8  ;;  %v986_v38 = vpack.c.bf16 %v608_v36, %v606_v35 }
  0x6c   : > { %893 = vmatmul.mubr.msk.f32.vlgmr.msra.gmra.mrb[0].mxu0 %vm304_vm1, %v260_v39  ;;  %v605_v39 = vld [vmem:[%s1619_s4 + $0x120] sm:$0xff] }
  0x6d   : > { %400 = vmatprep.mubr.f32.mxu0 %v1160_v0 }
  0x6e   : > { %969 = vmatpush1.bf16.msra.mxu1 %v968_v13 }
  0x6f   : > { %971 = vmatprep.subr.bf16.mxu1 %v970_v14 }
  0x70   : > { %894 = vmatmul.mubr.msk.f32.gmra.mrb[2].mxu0 %vm304_vm1, %v261_v40  ;;  %v607_v40 = vld [vmem:[%s1619_s4 + $0x130] sm:$0xff] }
  0x71   : > { %406 = vmatprep.mubr.f32.mxu0 %v1160_v0 }
  0x72   : > { %973 = vmatpush1.bf16.msra.mxu1 %v972_v19 }
  0x73   : > { %975 = vmatprep.subr.bf16.mxu1 %v974_v20 }
  0x74   : > { %895 = vmatmul.mubr.msk.f32.gmra.mrb[4].mxu0 %vm304_vm1, %v262_v41  ;;  %v610_v41 = vld [vmem:[%s1619_s4 + $0x148] sm:$0xff] }
  0x75   : > { %412 = vmatprep.mubr.f32.mxu0 %v1160_v0 }
  0x76   : > { %977 = vmatpush1.bf16.msra.mxu1 %v976_v25 }
  0x77   : > { %979 = vmatprep.subr.bf16.mxu1 %v978_v26 }
  0x78   : > { %896 = vmatmul.mubr.msk.f32.gmra.mrb[6].mxu0 %vm304_vm1, %v263_v42  ;;  %v612_v42 = vld [vmem:[%s1619_s4 + $0x158] sm:$0xff] }
  0x79   : > { %418 = vmatprep.mubr.f32.mxu0 %v1160_v0 }
  0x7a   : > { %981 = vmatpush1.bf16.msra.mxu1 %v980_v31 }
  0x7b   : > { %983 = vmatprep.subr.bf16.mxu1 %v982_v32 }
  0x7c   : > { %897 = vmatmul.mubr.msk.f32.gmra.mrb[8].mxu0 %vm304_vm1, %v264_v43  ;;  %v988_v43 = vpack.c.bf16 %v607_v40, %v605_v39  ;;  %v443_v40 = vld [vmem:[#allocation4] sm:$0xff] }
  0x7d   : > { %424 = vmatprep.mubr.f32.mxu0 %v1160_v0 }
  0x7e   : > { %985 = vmatpush1.bf16.msra.mxu1 %v984_v37 }
  0x7f   : > { %987 = vmatprep.subr.bf16.mxu1 %v986_v38 }
  0x80   : > { %898 = vmatmul.mubr.msk.f32.gmra.mrb[10].mxu0 %vm304_vm1, %v265_v44  ;;  %v990_v44 = vpack.c.bf16 %v612_v42, %v610_v41  ;;  %v444_v41 = vld [vmem:[#allocation4 + $0x8] sm:$0xff]  ;;  %v445_v42 = vld [vmem:[#allocation4 + $0x10] sm:$0xff] }
  0x81   : > { %532 = vmatprep.mubr.f32.mxu0 %v1160_v0 }
  0x82   : > { %989 = vmatpush1.bf16.msra.mxu1 %v988_v43  ;;  %v446_v43 = vld [vmem:[#allocation4 + $0x18] sm:$0xff] }
  0x83   : > { %991 = vmatprep.subr.bf16.mxu1 %v990_v44  ;;  %v447_v44 = vld [vmem:[#allocation4 + $0x20] sm:$0xff] }
  0x86   : > { %993 = vmatpush1.bf16.msra.mxu1 %v992_v49 }
  0x87   : > { %995 = vmatprep.subr.bf16.mxu1 %v994_v50 }
  0x8a   : > { %997 = vmatpush1.bf16.msra.mxu1 %v996_v53 }
  0x8b   : > { %686 = vmatprep.subr.mxu1 %v618_v46 }
  0x8e   : > { %687 = vmatpush1.msra.mxu1 %v617_v47 }
 0x13f   : > { %v396_v60 = vpop.f32.mrb[0].mxu0 }
 0x140   : > { %v398_v62 = vpop.f32.mrb[1].mxu0  ;;  %v397_v63 = vadd.f32 %v396_v60, %v297_v59 }
 0x141   : > { %v399_v1 = vadd.f32 %v398_v62, %v301_v61 }
 0x142   : > { %v431_v6 = vmax.f32 %v397_v63, 0.0 }
 0x143   : > { %v402_v2 = vpop.f32.mrb[2].mxu0  ;;  %v432_v8 = vmax.f32 %v399_v1, 0.0 }
 0x144   : > { %v403_v3 = vadd.f32 %v402_v2, %v297_v59  ;;  %v404_v4 = vpop.f32.mrb[3].mxu0 }
 0x145   : > { %v405_v5 = vadd.f32 %v404_v4, %v301_v61 }
 0x146   : > { %v433_v7 = vmax.f32 %v403_v3, 0.0 }
 0x147   : > { %v434_v9 = vmax.f32 %v405_v5, 0.0  ;;  %v408_v10 = vpop.f32.mrb[4].mxu0 }
 0x148   : > { %v940_v11 = vpack.c.bf16 %v433_v7, %v431_v6  ;;  %v410_v12 = vpop.f32.mrb[5].mxu0  ;;  %v409_v14 = vadd.f32 %v408_v10, %v297_v59 }
 0x149   : > { %v938_v13 = vpack.c.bf16 %v434_v9, %v432_v8  ;;  %v411_v15 = vadd.f32 %v410_v12, %v301_v61 }
 0x14a   : > { %v435_v20 = vmax.f32 %v409_v14, 0.0 }
 0x14b   : > { %v414_v16 = vpop.f32.mrb[6].mxu0  ;;  %939 = vmatprep.subr.bf16.mxu0 %v938_v13  ;;  %v436_v22 = vmax.f32 %v411_v15, 0.0 }
 0x14c   : > { %v415_v17 = vadd.f32 %v414_v16, %v297_v59  ;;  %v416_v18 = vpop.f32.mrb[7].mxu0  ;;  %941 = vmatpush1.bf16.msra.mxu0 %v940_v11 }
 0x14d   : > { %v417_v19 = vadd.f32 %v416_v18, %v301_v61 }
 0x14e   : > { %v437_v21 = vmax.f32 %v415_v17, 0.0 }
 0x14f   : > { %v438_v23 = vmax.f32 %v417_v19, 0.0  ;;  %v420_v24 = vpop.f32.mrb[8].mxu0 }
 0x150   : > { %v944_v25 = vpack.c.bf16 %v437_v21, %v435_v20  ;;  %v422_v26 = vpop.f32.mrb[9].mxu0  ;;  %v421_v28 = vadd.f32 %v420_v24, %v297_v59 }
 0x151   : > { %v942_v27 = vpack.c.bf16 %v438_v23, %v436_v22  ;;  %v423_v29 = vadd.f32 %v422_v26, %v301_v61 }
 0x152   : > { %v439_v34 = vmax.f32 %v421_v28, 0.0 }
 0x153   : > { %v426_v30 = vpop.f32.mrb[10].mxu0  ;;  %943 = vmatprep.subr.bf16.mxu0 %v942_v27  ;;  %v440_v36 = vmax.f32 %v423_v29, 0.0 }
 0x154   : > { %v427_v31 = vadd.f32 %v426_v30, %v297_v59  ;;  %v428_v32 = vpop.f32.mrb[11].mxu0  ;;  %945 = vmatpush1.bf16.msra.mxu0 %v944_v25 }
 0x155   : > { %v429_v33 = vadd.f32 %v428_v32, %v301_v61 }
 0x156   : > { %v441_v35 = vmax.f32 %v427_v31, 0.0 }
 0x157   : > { %v442_v37 = vmax.f32 %v429_v33, 0.0 }
 0x158   : > { %v948_v38 = vpack.c.bf16 %v441_v35, %v439_v34 }
 0x159   : > { %v946_v39 = vpack.c.bf16 %v442_v37, %v440_v36 }
 0x15b   : > { %947 = vmatprep.subr.bf16.mxu0 %v946_v39 }
 0x15c   : > { %949 = vmatpush1.bf16.msra.mxu0 %v948_v38 }
 0x15f   : > { %899 = vmatmul.mubr.msk.f32.vlgmr.msra.gmra.mrb[12].mxu0 %vm449_vm2, %v443_v40 }
 0x160   : > { %538 = vmatprep.mubr.f32.mxu0 %v1160_v0 }
 0x163   : > { %900 = vmatmul.mubr.msk.f32.gmra.mrb[14].mxu0 %vm449_vm2, %v444_v41 }
 0x164   : > { %544 = vmatprep.mubr.f32.mxu0 %v1160_v0 }
 0x167   : > { %901 = vmatmul.mubr.msk.f32.gmra.mrb[16].mxu0 %vm449_vm2, %v445_v42 }
 0x168   : > { %550 = vmatprep.mubr.f32.mxu0 %v1160_v0 }
 0x16b   : > { %902 = vmatmul.mubr.msk.f32.gmra.mrb[18].mxu0 %vm449_vm2, %v446_v43 }
 0x16c   : > { %556 = vmatprep.mubr.f32.mxu0 %v1160_v0 }
 0x16f   : > { %903 = vmatmul.mubr.msk.f32.gmra.mrb[20].mxu0 %vm449_vm2, %v447_v44 }
 0x170   : > { %562 = vmatprep.mubr.f32.mxu0 %v1160_v0 }
 0x173   : > { %904 = vmatmul.mubr.msk.f32.gmra.mrb[22].mxu0 %vm449_vm2, %v448_v45 }
 0x232   : > { %v534_v48 = vpop.f32.mrb[12].mxu0 }
 0x233   : > { %v536_v49 = vpop.f32.mrb[13].mxu0 }
 0x234   : > { %905 = vmatprep.mubr.msk.f32.mxu1 %vm619_vm3, %v536_v49 }
 0x235   : > { %703 = vmatmul.mubr.f32.vlgmr.msra.gmra.mrb[0].mxu1 %v534_v48 }
 0x236   : > { %v540_v0 = vpop.f32.mrb[14].mxu0 }
 0x237   : > { %v542_v50 = vpop.f32.mrb[15].mxu0 }
 0x238   : > { %906 = vmatprep.mubr.msk.f32.mxu1 %vm619_vm3, %v542_v50 }
 0x239   : > { %708 = vmatmul.mubr.f32.gmra.mrb[2].mxu1 %v540_v0 }
 0x23a   : > { %v546_v51 = vpop.f32.mrb[16].mxu0 }
 0x23b   : > { %v548_v52 = vpop.f32.mrb[17].mxu0 }
 0x23c   : > { %907 = vmatprep.mubr.msk.f32.mxu1 %vm619_vm3, %v548_v52 }
 0x23d   : > { %713 = vmatmul.mubr.f32.gmra.mrb[4].mxu1 %v546_v51 }
 0x23e   : > { %v552_v53 = vpop.f32.mrb[18].mxu0 }
 0x23f   : > { %v554_v54 = vpop.f32.mrb[19].mxu0 }
 0x240   : > { %908 = vmatprep.mubr.msk.f32.mxu1 %vm619_vm3, %v554_v54 }
 0x241   : > { %718 = vmatmul.mubr.f32.gmra.mrb[6].mxu1 %v552_v53 }
 0x242   : > { %v558_v55 = vpop.f32.mrb[20].mxu0 }
 0x243   : > { %v560_v56 = vpop.f32.mrb[21].mxu0 }
 0x244   : > { %909 = vmatprep.mubr.msk.f32.mxu1 %vm619_vm3, %v560_v56 }
 0x245   : > { %724 = vmatmul.mubr.f32.gmra.mrb[8].mxu1 %v558_v55 }
 0x246   : > { %v564_v57 = vpop.f32.mrb[22].mxu0 }
 0x247   : > { %v566_v58 = vpop.f32.mrb[23].mxu0 }
 0x248   : > { %910 = vmatprep.mubr.msk.f32.mxu1 %vm619_vm3, %v566_v58 }
 0x249   : > { %730 = vmatmul.mubr.f32.gmra.mrb[10].mxu1 %v564_v57 }
 0x308   : > { %v704_v59 = vpop.f32.mrb[0].mxu1 }
 0x309   : > { %v706_v60 = vpop.f32.mrb[1].mxu1 }
 0x30c   : > { %v709_v61 = vpop.f32.mrb[2].mxu1 }
 0x30d   : > { %v711_v62 = vpop.f32.mrb[3].mxu1  ;;  %v738_v1 = vrot.slane %v709_v61, 1 }
 0x310   : > { %v714_v63 = vpop.f32.mrb[4].mxu1 }
 0x311   : > { %v739_v2 = vrot.slane %v714_v63, 1  ;;  %v716_v3 = vpop.f32.mrb[5].mxu1  ;;  %v751_v6 = vrot.slane %v714_v63, 2 }
 0x313   : > { %743 = vrot.lane.b32.xlu0 %v739_v2, %s1161_s9  ;;  %v740_v4 = vsel %vm737_vm4, %v738_v1, %v739_v2 }
 0x314   : > { %v719_v5 = vpop.f32.mrb[6].mxu1 }
 0x315   : > { %v752_v7 = vrot.slane %v719_v5, 2  ;;  %v721_v8 = vpop.f32.mrb[7].mxu1  ;;  %v766_v11 = vrot.slane %v719_v5, 3 }
 0x316   : > { %v769_v14 = vrot.slane %v721_v8, 3 }
 0x317   : > { %741 = vrot.lane.b32.xlu0 %v740_v4, %s1161_s9  ;;  %756 = vrot.lane.b32.xlu1 %v752_v7, %s1162_s29  ;;  %v753_v9 = vsel %vm750_vm5, %v751_v6, %v752_v7 }
 0x318   : > { %v725_v10 = vpop.f32.mrb[8].mxu1 }
 0x319   : > { %v767_v12 = vrot.slane %v725_v10, 3  ;;  %v727_v13 = vpop.f32.mrb[9].mxu1 }
 0x31a   : > { %v770_v15 = vrot.slane %v727_v13, 3  ;;  %v788_v20 = vrot.slane %v727_v13, 4 }
 0x31b   : > { %754 = vrot.lane.b32.xlu1 %v753_v9, %s1162_s29  ;;  %776 = vrot.lane.b32.xlu0 %v767_v12, %s1163_s10  ;;  %v768_v16 = vsel %vm765_vm6, %v766_v11, %v767_v12 }
 0x31c   : > { %v731_v17 = vpop.f32.mrb[10].mxu1  ;;  %v771_v18 = vsel %vm765_vm6, %v769_v14, %v770_v15 }
 0x31d   : > { %v732_v19 = vpop.f32.mrb[11].mxu1 }
 0x31e   : > { %v789_v21 = vrot.slane %v732_v19, 4 }
 0x31f   : > { %772 = vrot.lane.b32.xlu0 %v768_v16, %s1163_s10  ;;  %778 = vrot.lane.b32.xlu1 %v770_v15, %s1163_s10 }
 0x320   : > { %v790_v22 = vsel %vm323_vm0, %v788_v20, %v789_v21 }
 0x323   : > { %774 = vrot.lane.b32.xlu1 %v771_v18, %s1163_s10  ;;  %791 = vrot.lane.b32.xlu0 %v790_v22, %s1164_s24 }
 0x327   : > { %793 = vrot.lane.b32.xlu1 %v789_v21, %s1164_s24 }
 0x385   : > { %v744_v23 = vpop.permute.xlu0 %743 }
 0x386   : > { %v748_v31 = vadd.f32 %v744_v23, %v709_v61 }
 0x389   : > { %v742_v24 = vpop.permute.xlu0 %741  ;;  %v757_v25 = vpop.permute.xlu1 %756 }
 0x38a   : > { %v747_v30 = vadd.f32 %v742_v24, %v704_v59  ;;  %v761_v35 = vadd.f32 %v757_v25, %v748_v31 }
 0x38d   : > { %v755_v26 = vpop.permute.xlu1 %754  ;;  %v777_v27 = vpop.permute.xlu0 %776 }
 0x38e   : > { %v760_v32 = vadd.f32 %v755_v26, %v747_v30 }
 0x391   : > { %v779_v28 = vpop.permute.xlu1 %778  ;;  %v773_v29 = vpop.permute.xlu0 %772 }
 0x392   : > { %v782_v33 = vsel %vm780_vm7, %v777_v27, %v779_v28 }
 0x393   : > { %v786_v39 = vadd.f32 %v782_v33, %v761_v35 }
 0x395   : > { %v775_v34 = vpop.permute.xlu1 %774  ;;  %v792_v38 = vpop.permute.xlu0 %791 }
 0x396   : > { %v781_v36 = vsel %vm780_vm7, %v773_v29, %v775_v34 }
 0x397   : > { %v785_v37 = vadd.f32 %v781_v36, %v760_v32 }
 0x399   : > { %v797_v40 = vadd.f32 %v792_v38, %v785_v37  ;;  %v794_v41 = vpop.permute.xlu1 %793 }
 0x39a   : > { %v798_v42 = vadd.f32 %v794_v41, %v786_v39 }
 0x39b   : > { %v799_v43 = vmax.f32 %v797_v40, 0.0 }
 0x39c   : > { %v800_v44 = vmax.f32 %v798_v42, 0.0 }
 0x39d   : > { %802 = vst.msk [vmem:[%s259_s8] sm:$0xff] %vm801_vm8, %v799_v43 }
 0x39e   : > { %804 = vst.msk [vmem:[%s259_s8 + $0x8] sm:$0x1] %vm803_vm9, %v800_v44 }
 0x39f PF: > { %s1632_s22 = smov %s1268_s18  ;;  %p16_p1 = scmp.ge.s32.totalorder %s1239_s28, 4  }
 0x3a0   : > { %s1633_s18 = smov %s1146_s19  ;;  %s1634_s19 = smov %s1150_s20 }
 0x3a1   : > { %s1635_s20 = smov %s1632_s22  ;;  %s1636_s21 = smov %s1239_s28 }
 0x3a2   :  { %18 = sbr.rel (!%p16_p1) target bundleno = 4 (0x4), region = 84 }
 0x3a9   :  { %826 = vsyncpa [#allocation3], 1 }
 0x3aa   :  { %828 = vsyncpa [#allocation3 + $0x1], 1 }
 0x3ab   :  { %829 = vsyncpa [#allocation5], 1 }

</bundles_post_ra>
